<compile_context>
chip_gen: v7x
topology: tpu7x:2x2x1
jax: 0.10.0
libtpu: 0.0.40
codegen_flags: <defaults>
</compile_context>

<pallas_src>
import jax
import jax.numpy as jnp
from jax.experimental import pallas as pl
from jax.experimental.pallas import tpu as pltpu


def _gamma_kernel(x_ref, ht_ref, o_ref):
    # x_ref: (TB, IN) f32, ht_ref: (IN, OUT) (|H| pre-applied, pre-transposed,
    # possibly bf16), o_ref: (TB, OUT) f32.
    x = x_ref[...].astype(ht_ref.dtype)               # cheap VPU cast (bf16 path)
    y = jnp.dot(x, ht_ref[...],
                preferred_element_type=jnp.float32)   # MXU, f32 accumulation
    o_ref[...] = jnp.tanh(y).astype(o_ref.dtype)      # EUP, f32


def _round_up(a, m):
    return ((a + m - 1) // m) * m


def gamma_layer_forward(x, H, b=None, *, batch_tile=4096, use_bf16=True):
    """Pallas equivalent of gamma_layer.forward: tanh(x @ |H|^T).

    x: (B, in_ch) float32
    H: (out_ch, in_ch) float32
    b: (out_ch,) -- present in the module but NOT used in forward.
    """
    B, IN = x.shape
    OUT, IN2 = H.shape
    assert IN == IN2

    # Hoist |H|, transpose, and the optional bf16 cast once in the wrapper --
    # H is constant across all batch tiles.  No lane padding: OUT stays the
    # full (and only) output width, keeping HBM writeback lane-tight.
    compute_dtype = jnp.bfloat16 if use_bf16 else x.dtype
    Ht = jnp.abs(H).T.astype(compute_dtype)            # (IN, OUT)

    # Batch tiling: TB is a multiple of 8 (sublane), at most `batch_tile`.
    # No wrapper-side pad of x: the grid is cdiv(B, TB) and Pallas bounds the
    # ragged final block (OOB rows are never stored to the (B, OUT) output).
    TB = min(batch_tile, _round_up(B, 8))
    n_steps = pl.cdiv(B, TB)
    if n_steps < 2 and B >= 16:
        # v7x megacore: give the "parallel" grid >= 2 steps so both TCs are used.
        TB = _round_up(pl.cdiv(B, 2), 8)
        n_steps = pl.cdiv(B, TB)
    grid = (n_steps,)

    out = pl.pallas_call(
        _gamma_kernel,
        out_shape=jax.ShapeDtypeStruct((B, OUT), jnp.float32),
        grid=grid,
        in_specs=[
            pl.BlockSpec((TB, IN), lambda i: (i, 0)),     # batch-tiled x
            pl.BlockSpec((IN, OUT), lambda i: (0, 0)),    # Ht resident
        ],
        out_specs=pl.BlockSpec((TB, OUT), lambda i: (i, 0)),
        compiler_params=pltpu.CompilerParams(
            dimension_semantics=("parallel",)),           # megacore-shardable
    )(x, Ht)

    return out


if __name__ == "__main__":
    key = jax.random.PRNGKey(0)
    k_x, k_H, k_b = jax.random.split(key, 3)

    batch = 8
    input_channel = 32
    output_channel = 16

    # Deterministic parameter init matching the module's __init__ distributions.
    H = 0.1 * jax.random.normal(k_H, (output_channel, input_channel), dtype=jnp.float32)
    b = 0.001 * jax.random.normal(k_b, (output_channel,), dtype=jnp.float32)  # unused in forward
    x = jax.random.normal(k_x, (batch, input_channel), dtype=jnp.float32)

    ref = jnp.tanh(x @ jnp.abs(H).T)

    # Production path: bf16 MXU inputs, f32 accumulation.
    out_bf16 = jax.block_until_ready(gamma_layer_forward(x, H, b, use_bf16=True))
    assert out_bf16.shape == (batch, output_channel)
    assert jnp.allclose(out_bf16, ref, atol=5e-3, rtol=5e-3), "bf16 path mismatch vs reference"

    # Full-precision path for exact parity with the PyTorch reference.
    out_f32 = jax.block_until_ready(gamma_layer_forward(x, H, b, use_bf16=False))
    assert out_f32.shape == (batch, output_channel)
    assert jnp.allclose(out_f32, ref, atol=1e-5, rtol=1e-5), "f32 path mismatch vs reference"

    print("KERNEL_OK")
</pallas_src>

<mosaic_0001>
module attributes {stable_mosaic.version = 11 : i64} {
  func.func @_gamma_kernel(%arg0: i32, %arg1: memref<8x32xf32, #tpu.memory_space<vmem>>, %arg2: memref<32x16xbf16, #tpu.memory_space<vmem>>, %arg3: memref<8x16xf32, #tpu.memory_space<vmem>>) attributes {dimension_semantics = [#tpu.dimension_semantics<parallel>], iteration_bounds = array<i64: 1>, scalar_prefetch = 0 : i64, scratch_operands = 0 : i64, tpu.core_type = #tpu.core_type<tc>, window_params = [{transform_indices = @transform_0, window_bounds = array<i64: 8, 32>}, {pipeline_mode = #tpu.pipeline_mode<synchronous>, transform_indices = @transform_1, window_bounds = array<i64: 32, 16>}, {transform_indices = @transform_2, window_bounds = array<i64: 8, 16>}]} {
    %c0 = arith.constant 0 : index
    %c0_0 = arith.constant 0 : index
    %0 = vector.load %arg1[%c0, %c0_0] : memref<8x32xf32, #tpu.memory_space<vmem>>, vector<8x32xf32>
    %1 = arith.truncf %0 : vector<8x32xf32> to vector<8x32xbf16>
    %c0_1 = arith.constant 0 : index
    %c0_2 = arith.constant 0 : index
    %2 = vector.load %arg2[%c0_1, %c0_2] : memref<32x16xbf16, #tpu.memory_space<vmem>>, vector<32x16xbf16>
    %cst = arith.constant dense<0.000000e+00> : vector<8x16xf32>
    %3 = tpu.matmul %1, %2, %cst {dimension_numbers = #tpu.dot_dimension_numbers<[1], [0], [0], [1], [0, 0, 1, 1], [], []>} : vector<8x32xbf16>, vector<32x16xbf16>, vector<8x16xf32> -> vector<8x16xf32>
    %4 = math.tanh %3 : vector<8x16xf32>
    %c0_3 = arith.constant 0 : index
    %c0_4 = arith.constant 0 : index
    %5 = vector.load %arg3[%c0_3, %c0_4] : memref<8x16xf32, #tpu.memory_space<vmem>>, vector<8x16xf32>
    tpu.vector_store %arg3[%c0_3, %c0_4], %4 {strides = array<i32>} : memref<8x16xf32, #tpu.memory_space<vmem>>, vector<8x16xf32>,
    return
  }
  func.func @transform_0(%arg0: i32) -> (i32, i32) {
    %c0_i32 = arith.constant 0 : i32
    %c0_i32_0 = arith.constant 0 : i32
    return %arg0, %c0_i32 : i32, i32
  }
  func.func @transform_1(%arg0: i32) -> (i32, i32) {
    %c0_i32 = arith.constant 0 : i32
    %c0_i32_0 = arith.constant 0 : i32
    %c0_i32_1 = arith.constant 0 : i32
    return %c0_i32, %c0_i32_0 : i32, i32
  }
  func.func @transform_2(%arg0: i32) -> (i32, i32) {
    %c0_i32 = arith.constant 0 : i32
    %c0_i32_0 = arith.constant 0 : i32
    return %arg0, %c0_i32 : i32, i32
  }
}

</mosaic_0001>

<bundles_post_ra>
// kernel: tpu_custom_call.1
= control target key start
LH: loop header
LB: loop body
LE: loop exit
PB: predicated region body
PF: predicated region fallthrough
CT: control target
= control target key end

     0   :  { %v137_v1 = vmov 0.0   ;;  %vm138_vm0 = vmmov 0   ;;  %s176_s0 = inlined_call_operand.vmem [shape: f32[8,32], index: 0, kind: input, shape index: {}]   ;;  %s177_s1 = inlined_call_operand.vmem [shape: bf16[32,16], index: 1, kind: input, shape index: {}]   ;;  %s178_s2 = inlined_call_operand.hbm [shape: f32[8,16], index: 2, kind: output, shape index: {}]  }
   0x1   :  { %v109_v0 = vld [vmem:[%s177_s1] sm:$0xff]   ;;  %98 = vmatprep.subr.bf16.mxu0 %v137_v1  ;;  %v110_v2 = vld [vmem:[%s177_s1 + $0x8] sm:$0xff]   ;;  %102 = vmatprep.mubr.msk.bf16.mxu0 %vm138_vm0, %v137_v1 }
   0x2   :  { %99 = vmatpush3.bf16.msra.mxu0 %v109_v0  ;;  %v13_v3 = vld [vmem:[%s176_s0] sm:$0xff] }
   0x3   :  { %7 = vsyncpa [#allocation3], 0  ;;  %100 = vmatprep.subr.bf16.mxu0 %v137_v1  ;;  %v14_v4 = vpack.c.bf16 %v13_v3, %v13_v3  ;;  %vm31_vm1 = vcmask 261120   ;;  %s139_s15 = smov [#allocation2]   ;;  %vm76_vm2 = vcmask 130048  }
   0x4   :  { %s84_s16 = sshll.u32 %s139_s15, 4  ;;  %s85_s16 = int_to_ptr.vmem [resolvable:$true] %s84_s16 }
   0x5   :  { %s113_s1 = scalar_lea.vmem %s85_s16, 128  ;;  %p118_p1 = scmp.lt.s32.totalorder %s85_s16, %s85_s16 }
   0x6   :  { %101 = vmatpush3.bf16.msra.mxu0 %v110_v2  ;;  %p114_p0 = scmp.ne.s32.totalorder %s85_s16, %s113_s1  ;;  %p119_p2 = scmp.lt.s32.totalorder %s113_s1, %s113_s1 }
   0x8   :  { %p120_p3 = por %p119_p2, %p118_p1 }
   0x9   :  { %103 = vmatmul.mubr.msk.bf16.vlgmr.msra.gmra.mrb[0].mxu0 %vm31_vm1, %v14_v4 }
   0xa   :  { %p121_p4 = pnand %p120_p3, %p114_p0 }
  0xdc   :  { %v69_v5 = vpop.f32.mrb[0].mxu0 }
  0xdd   :  { %111 = vtanh.f32 %v69_v5  ;;  %v104_v6 = vpop.f32.mrb[1].mxu0 }
  0xde   :  { %v72_v7 = vpop.f32.mrb[2].mxu0 }
  0xdf   :  { %v105_v8 = vpop.f32.mrb[3].mxu0 }
  0xe7   :  { %v112_v9 = vpop.eup %111 }
  0xe8   :  { %77 = vst.msk [vmem:[#allocation2] sm:$0xff] %vm76_vm2, %v112_v9 }
  0xe9   :  { %124 = shalt.err (!%p121_p4)
}
  0xea   :  { %s125_s18 = scalar_lea.hbm %s178_s2, 128 }
  0xeb   :  { %p126_p5 = scmp.ne.s32.totalorder %s178_s2, %s125_s18  ;;  %p129_p6 = scmp.lt.u32.totalorder %s125_s18, %s178_s2 }
  0xed   :  { %p131_p7 = pnand %p129_p6, %p126_p5 }
  0xef   :  { %134 = shalt.err (!%p131_p7)
}
  0xf0   :  { %87 = dma.vmem_to_hbm [thread:$0]  %s85_s16, 128, %s178_s2, [#allocation3]  }
  0xf1   :  { %135 = dma.done.wait [#allocation3], 128  }
  0xf2   :  { %136 = vsyncadd [#allocation3], 4294967168 }
  0xf3   :  { %91 = vsyncpa [#allocation3], 1 }

</bundles_post_ra>
